<compile_context>
chip_gen: v6e
topology: v6e:2x2x1
jax: 0.10.0
libtpu: 0.0.40
codegen_flags: <defaults>
</compile_context>

<pallas_src>
import functools

import jax
import jax.numpy as jnp
from jax import lax
from jax.experimental import pallas as pl
from jax.experimental.pallas import tpu as pltpu

EPS = 1e-5
NEG_SLOPE = 0.2
KH = KW = 4  # Conv2d kernel size is fixed to 4 in the module


def _round_up(x, m):
    return (x + m - 1) // m * m


# ---------------------------------------------------------------------------
# Pass 1: per-row-tile conv matmul + per-channel sum / sum-of-squares.
# Outputs are resident accumulators (same block for every grid step).
# ---------------------------------------------------------------------------
def _stats_kernel(p_ref, w_ref, sum_ref, sq_ref):
    @pl.when(pl.program_id(0) == 0)
    def _():
        sum_ref[...] = jnp.zeros_like(sum_ref)
        sq_ref[...] = jnp.zeros_like(sq_ref)

    y = jnp.dot(p_ref[...], w_ref[...], preferred_element_type=jnp.float32)
    sum_ref[...] += jnp.sum(y, axis=0, keepdims=True)
    sq_ref[...] += jnp.sum(y * y, axis=0, keepdims=True)


# ---------------------------------------------------------------------------
# Pass 2: recompute tile matmul, fused affine BN + LeakyReLU(0.2).
# ---------------------------------------------------------------------------
def _apply_kernel(p_ref, w_ref, scale_ref, shift_ref, o_ref):
    y = jnp.dot(p_ref[...], w_ref[...], preferred_element_type=jnp.float32)
    t = y * scale_ref[...] + shift_ref[...]
    o_ref[...] = jnp.where(t >= 0, t, jnp.float32(NEG_SLOPE) * t)


def _im2col_reflect(x, stride):
    """x: (N, Cin, H, W) f32 -> bf16 patches (N*Ho*Wo, Cin*KH*KW), reflect pad=1."""
    n, cin, h, w = x.shape
    x_pad = jnp.pad(x, ((0, 0), (0, 0), (1, 1), (1, 1)), mode="reflect")
    x_pad = x_pad.astype(jnp.bfloat16)  # bf16 feed: halves im2col glue + HBM read
    ho = (h + 2 - KH) // stride + 1
    wo = (w + 2 - KW) // stride + 1
    cols = []
    for kh in range(KH):
        for kw in range(KW):
            cols.append(x_pad[:, :, kh:kh + stride * (ho - 1) + 1:stride,
                                    kw:kw + stride * (wo - 1) + 1:stride])
    # (16, N, Cin, Ho, Wo) -> (N, Ho, Wo, Cin, 16); flatten order matches the
    # PyTorch Conv2d weight flatten order (Cin, KH, KW).
    patches = jnp.stack(cols, axis=0).transpose(1, 3, 4, 2, 0)
    patches = patches.reshape(n * ho * wo, cin * KH * KW)
    return patches, ho, wo


@functools.partial(jax.jit, static_argnames=("stride", "tile_p", "nhwc_out"))
def cnn_block(x, weight, gamma, beta, *, stride, tile_p=None, nhwc_out=False):
    """Forward pass of CNNBlock.

    x      : (N, Cin, H, W)    float32, NCHW
    weight : (Cout, Cin, 4, 4) float32 (PyTorch Conv2d layout)
    gamma  : (Cout,) BN weight
    beta   : (Cout,) BN bias
    returns: (N, Cout, Ho, Wo) float32 (or NHWC if nhwc_out=True, to let a
             following CNNBlock skip the layout transpose)
    """
    n, cin, _, _ = x.shape
    cout = weight.shape[0]

    patches, ho, wo = _im2col_reflect(x, stride)     # (P, K) bf16
    p_rows, k_dim = patches.shape

    # --- tile / pad geometry ------------------------------------------------
    if tile_p is None:
        tile_p = 512 if p_rows >= 512 else _round_up(p_rows, 16)
    tile_p = max(16, _round_up(tile_p, 16))          # bf16 sublane packing
    p_pad = _round_up(p_rows, tile_p)                # zero rows: no effect on stats
    k_pad = _round_up(k_dim, 128)                    # lane-dense contraction
    c_pad = _round_up(cout, 128)                     # lane-dense output (unmasked vst)
    num_tiles = p_pad // tile_p

    patches = jnp.pad(patches, ((0, p_pad - p_rows), (0, k_pad - k_dim)))
    w2d = weight.reshape(cout, k_dim).T.astype(jnp.bfloat16)        # (K, Cout)
    w2d = jnp.pad(w2d, ((0, k_pad - k_dim), (0, c_pad - cout)))
    g2d = jnp.pad(gamma.astype(jnp.float32).reshape(1, cout),
                  ((0, 0), (0, c_pad - cout)))
    b2d = jnp.pad(beta.astype(jnp.float32).reshape(1, cout),
                  ((0, 0), (0, c_pad - cout)))

    # --- VMEM budget (explicit; sized to fit v7x's 64 MiB) -------------------
    vmem_need = (2 * tile_p * k_pad * 2      # double-buffered bf16 patch tiles
                 + 2 * k_pad * c_pad * 2     # bf16 weight (resident)
                 + 2 * tile_p * c_pad * 4    # double-buffered f32 output tiles
                 + 8 * c_pad * 4             # stats / scale / shift
                 + (4 << 20))                # headroom
    vmem_limit = int(min(max(vmem_need, 32 << 20), 60 << 20))

    flops = 2 * p_pad * k_pad * c_pad
    bytes_in = p_pad * k_pad * 2 + k_pad * c_pad * 2
    stats_cost = pl.CostEstimate(flops=flops, transcendentals=0,
                                 bytes_accessed=bytes_in + 2 * c_pad * 4)
    apply_cost = pl.CostEstimate(flops=flops, transcendentals=0,
                                 bytes_accessed=bytes_in + p_pad * c_pad * 4)

    # --- pass 1: conv matmul + batch statistics ------------------------------
    s_sum, s_sq = pl.pallas_call(
        _stats_kernel,
        out_shape=(jax.ShapeDtypeStruct((1, c_pad), jnp.float32),
                   jax.ShapeDtypeStruct((1, c_pad), jnp.float32)),
        grid=(num_tiles,),
        in_specs=[
            pl.BlockSpec((tile_p, k_pad), lambda i: (i, 0)),
            pl.BlockSpec((k_pad, c_pad), lambda i: (0, 0)),
        ],
        out_specs=(
            pl.BlockSpec((1, c_pad), lambda i: (0, 0)),
            pl.BlockSpec((1, c_pad), lambda i: (0, 0)),
        ),
        compiler_params=pltpu.CompilerParams(
            dimension_semantics=("arbitrary",),
            vmem_limit_bytes=vmem_limit),
        cost_estimate=stats_cost,
    )(patches, w2d)

    # Tiny (1, C) scalar-ish math: fold BN into a single per-channel affine.
    inv_p = jnp.float32(1.0 / p_rows)
    mean = s_sum * inv_p
    var = jnp.maximum(s_sq * inv_p - mean * mean, 0.0)   # biased var (train-mode BN)
    inv_std = lax.rsqrt(var + jnp.float32(EPS))
    scale = g2d * inv_std
    shift = b2d - mean * scale

    # --- pass 2: normalize + LeakyReLU, row tiles independent ("parallel") ---
    out_rows = pl.pallas_call(
        _apply_kernel,
        out_shape=jax.ShapeDtypeStruct((p_pad, c_pad), jnp.float32),
        grid=(num_tiles,),
        in_specs=[
            pl.BlockSpec((tile_p, k_pad), lambda i: (i, 0)),
            pl.BlockSpec((k_pad, c_pad), lambda i: (0, 0)),
            pl.BlockSpec((1, c_pad), lambda i: (0, 0)),
            pl.BlockSpec((1, c_pad), lambda i: (0, 0)),
        ],
        out_specs=pl.BlockSpec((tile_p, c_pad), lambda i: (i, 0)),
        compiler_params=pltpu.CompilerParams(
            dimension_semantics=("parallel",),
            vmem_limit_bytes=vmem_limit),
        cost_estimate=apply_cost,
    )(patches, w2d, scale, shift)

    out = out_rows[:p_rows, :cout].reshape(n, ho, wo, cout)   # NHWC
    if nhwc_out:
        return out
    return out.transpose(0, 3, 1, 2)                          # NCHW (PyTorch)


def _reference(x, weight, gamma, beta, stride):
    """Pure-JAX f32 reference of the PyTorch forward (training-mode BN)."""
    x_pad = jnp.pad(x, ((0, 0), (0, 0), (1, 1), (1, 1)), mode="reflect")
    y = lax.conv_general_dilated(
        x_pad, weight, window_strides=(stride, stride), padding="VALID",
        dimension_numbers=("NCHW", "OIHW", "NCHW"))
    mean = y.mean(axis=(0, 2, 3), keepdims=True)
    var = ((y - mean) ** 2).mean(axis=(0, 2, 3), keepdims=True)
    yn = (y - mean) / jnp.sqrt(var + EPS)
    yn = yn * gamma.reshape(1, -1, 1, 1) + beta.reshape(1, -1, 1, 1)
    return jnp.where(yn >= 0, yn, NEG_SLOPE * yn)


if __name__ == "__main__":
    # Small shapes consistent with the module: batch=2, in=4, out=8, 16x16, stride=2.
    N, CIN, COUT, H, W, STRIDE = 2, 4, 8, 16, 16, 2

    key = jax.random.PRNGKey(0)
    kx, kw = jax.random.split(key)
    x = jax.random.normal(kx, (N, CIN, H, W), dtype=jnp.float32)
    weight = 0.1 * jax.random.normal(kw, (COUT, CIN, KH, KW), dtype=jnp.float32)
    gamma = jnp.ones((COUT,), jnp.float32)   # nn.BatchNorm2d default init
    beta = jnp.zeros((COUT,), jnp.float32)

    # tile_p=64 -> 2 row tiles at this small size so the tiled stats
    # accumulation / apply grid is actually exercised (auto-tile picks 512 for
    # realistic discriminator shapes).
    out = cnn_block(x, weight, gamma, beta, stride=STRIDE, tile_p=64)
    jax.block_until_ready(out)

    ref = _reference(x, weight, gamma, beta, STRIDE)
    assert out.shape == (N, COUT, H // STRIDE, W // STRIDE), out.shape
    # bf16 MXU feeds (f32 accumulate) vs the f32 reference -> loosened tolerance.
    max_err = float(jnp.max(jnp.abs(out - ref)))
    assert jnp.allclose(out, ref, atol=5e-2, rtol=5e-2), max_err

    print("KERNEL_OK")
</pallas_src>

<mosaic_0001>
module attributes {stable_mosaic.version = 11 : i64} {
  func.func @_stats_kernel(%arg0: i32, %arg1: memref<64x128xbf16, #tpu.memory_space<vmem>>, %arg2: memref<128x128xbf16, #tpu.memory_space<vmem>>, %arg3: memref<1x128xf32, #tpu.memory_space<vmem>>, %arg4: memref<1x128xf32, #tpu.memory_space<vmem>>) attributes {dimension_semantics = [#tpu.dimension_semantics<arbitrary>], iteration_bounds = array<i64: 2>, scalar_prefetch = 0 : i64, scratch_operands = 0 : i64, tpu.core_type = #tpu.core_type<tc>, window_params = [{transform_indices = @transform_0, window_bounds = array<i64: 64, 128>}, {pipeline_mode = #tpu.pipeline_mode<synchronous>, transform_indices = @transform_1, window_bounds = array<i64: 128, 128>}, {pipeline_mode = #tpu.pipeline_mode<synchronous>, transform_indices = @transform_2, window_bounds = array<i64: 1, 128>}, {pipeline_mode = #tpu.pipeline_mode<synchronous>, transform_indices = @transform_3, window_bounds = array<i64: 1, 128>}]} {
    %c0_i32 = arith.constant 0 : i32
    %0 = arith.cmpi eq, %arg0, %c0_i32 : i32
    %1 = arith.extui %0 : i1 to i32
    %c0_i32_0 = arith.constant 0 : i32
    %2 = arith.cmpi ne, %1, %c0_i32_0 : i32
    scf.if %2 {
      %cst_14 = arith.constant 0.000000e+00 : f32
      %17 = vector.broadcast %cst_14 : f32 to vector<1x128xf32>
      %c0_15 = arith.constant 0 : index
      %c0_16 = arith.constant 0 : index
      %18 = vector.load %arg3[%c0_15, %c0_16] : memref<1x128xf32, #tpu.memory_space<vmem>>, vector<1x128xf32>
      tpu.vector_store %arg3[%c0_15, %c0_16], %17 {strides = array<i32>} : memref<1x128xf32, #tpu.memory_space<vmem>>, vector<1x128xf32>,
      %cst_17 = arith.constant 0.000000e+00 : f32
      %19 = vector.broadcast %cst_17 : f32 to vector<1x128xf32>
      %c0_18 = arith.constant 0 : index
      %c0_19 = arith.constant 0 : index
      %20 = vector.load %arg4[%c0_18, %c0_19] : memref<1x128xf32, #tpu.memory_space<vmem>>, vector<1x128xf32>
      tpu.vector_store %arg4[%c0_18, %c0_19], %19 {strides = array<i32>} : memref<1x128xf32, #tpu.memory_space<vmem>>, vector<1x128xf32>,
    } else {
    }
    %c0 = arith.constant 0 : index
    %c0_1 = arith.constant 0 : index
    %3 = vector.load %arg1[%c0, %c0_1] : memref<64x128xbf16, #tpu.memory_space<vmem>>, vector<64x128xbf16>
    %c0_2 = arith.constant 0 : index
    %c0_3 = arith.constant 0 : index
    %4 = vector.load %arg2[%c0_2, %c0_3] : memref<128x128xbf16, #tpu.memory_space<vmem>>, vector<128x128xbf16>
    %cst = arith.constant dense<0.000000e+00> : vector<64x128xf32>
    %5 = tpu.matmul %3, %4, %cst {dimension_numbers = #tpu.dot_dimension_numbers<[1], [0], [0], [1], [0, 0, 1, 1], [], []>} : vector<64x128xbf16>, vector<128x128xbf16>, vector<64x128xf32> -> vector<64x128xf32>
    %c0_4 = arith.constant 0 : index
    %c0_5 = arith.constant 0 : index
    %6 = vector.load %arg3[%c0_4, %c0_5] : memref<1x128xf32, #tpu.memory_space<vmem>>, vector<1x128xf32>
    %cst_6 = arith.constant dense<0.000000e+00> : vector<128xf32>
    %7 = vector.multi_reduction <add>, %5, %cst_6 [0] : vector<64x128xf32> to vector<128xf32>
    %8 = vector.shape_cast %7 : vector<128xf32> to vector<1x128xf32>
    %9 = arith.addf %6, %8 : vector<1x128xf32>
    %c0_7 = arith.constant 0 : index
    %c0_8 = arith.constant 0 : index
    %10 = vector.load %arg3[%c0_7, %c0_8] : memref<1x128xf32, #tpu.memory_space<vmem>>, vector<1x128xf32>
    tpu.vector_store %arg3[%c0_7, %c0_8], %9 {strides = array<i32>} : memref<1x128xf32, #tpu.memory_space<vmem>>, vector<1x128xf32>,
    %c0_9 = arith.constant 0 : index
    %c0_10 = arith.constant 0 : index
    %11 = vector.load %arg4[%c0_9, %c0_10] : memref<1x128xf32, #tpu.memory_space<vmem>>, vector<1x128xf32>
    %12 = arith.mulf %5, %5 : vector<64x128xf32>
    %cst_11 = arith.constant dense<0.000000e+00> : vector<128xf32>
    %13 = vector.multi_reduction <add>, %12, %cst_11 [0] : vector<64x128xf32> to vector<128xf32>
    %14 = vector.shape_cast %13 : vector<128xf32> to vector<1x128xf32>
    %15 = arith.addf %11, %14 : vector<1x128xf32>
    %c0_12 = arith.constant 0 : index
    %c0_13 = arith.constant 0 : index
    %16 = vector.load %arg4[%c0_12, %c0_13] : memref<1x128xf32, #tpu.memory_space<vmem>>, vector<1x128xf32>
    tpu.vector_store %arg4[%c0_12, %c0_13], %15 {strides = array<i32>} : memref<1x128xf32, #tpu.memory_space<vmem>>, vector<1x128xf32>,
    return
  }
  func.func @transform_0(%arg0: i32) -> (i32, i32) {
    %c0_i32 = arith.constant 0 : i32
    %c0_i32_0 = arith.constant 0 : i32
    return %arg0, %c0_i32 : i32, i32
  }
  func.func @transform_1(%arg0: i32) -> (i32, i32) {
    %c0_i32 = arith.constant 0 : i32
    %c0_i32_0 = arith.constant 0 : i32
    %c0_i32_1 = arith.constant 0 : i32
    return %c0_i32, %c0_i32_0 : i32, i32
  }
  func.func @transform_2(%arg0: i32) -> (i32, i32) {
    %c0_i32 = arith.constant 0 : i32
    %c0_i32_0 = arith.constant 0 : i32
    %c0_i32_1 = arith.constant 0 : i32
    return %c0_i32, %c0_i32_0 : i32, i32
  }
  func.func @transform_3(%arg0: i32) -> (i32, i32) {
    %c0_i32 = arith.constant 0 : i32
    %c0_i32_0 = arith.constant 0 : i32
    %c0_i32_1 = arith.constant 0 : i32
    return %c0_i32, %c0_i32_0 : i32, i32
  }
}

module attributes {stable_mosaic.version = 11 : i64} {
  func.func @_apply_kernel(%arg0: i32, %arg1: memref<64x128xbf16, #tpu.memory_space<vmem>>, %arg2: memref<128x128xbf16, #tpu.memory_space<vmem>>, %arg3: memref<1x128xf32, #tpu.memory_space<vmem>>, %arg4: memref<1x128xf32, #tpu.memory_space<vmem>>, %arg5: memref<64x128xf32, #tpu.memory_space<vmem>>) attributes {dimension_semantics = [#tpu.dimension_semantics<parallel>], iteration_bounds = array<i64: 2>, scalar_prefetch = 0 : i64, scratch_operands = 0 : i64, tpu.core_type = #tpu.core_type<tc>, window_params = [{transform_indices = @transform_0, window_bounds = array<i64: 64, 128>}, {pipeline_mode = #tpu.pipeline_mode<synchronous>, transform_indices = @transform_1, window_bounds = array<i64: 128, 128>}, {pipeline_mode = #tpu.pipeline_mode<synchronous>, transform_indices = @transform_2, window_bounds = array<i64: 1, 128>}, {pipeline_mode = #tpu.pipeline_mode<synchronous>, transform_indices = @transform_3, window_bounds = array<i64: 1, 128>}, {transform_indices = @transform_4, window_bounds = array<i64: 64, 128>}]} {
    %c0 = arith.constant 0 : index
    %c0_0 = arith.constant 0 : index
    %0 = vector.load %arg1[%c0, %c0_0] : memref<64x128xbf16, #tpu.memory_space<vmem>>, vector<64x128xbf16>
    %c0_1 = arith.constant 0 : index
    %c0_2 = arith.constant 0 : index
    %1 = vector.load %arg2[%c0_1, %c0_2] : memref<128x128xbf16, #tpu.memory_space<vmem>>, vector<128x128xbf16>
    %cst = arith.constant dense<0.000000e+00> : vector<64x128xf32>
    %2 = tpu.matmul %0, %1, %cst {dimension_numbers = #tpu.dot_dimension_numbers<[1], [0], [0], [1], [0, 0, 1, 1], [], []>} : vector<64x128xbf16>, vector<128x128xbf16>, vector<64x128xf32> -> vector<64x128xf32>
    %c0_3 = arith.constant 0 : index
    %c0_4 = arith.constant 0 : index
    %3 = vector.load %arg3[%c0_3, %c0_4] : memref<1x128xf32, #tpu.memory_space<vmem>>, vector<1x128xf32>
    %4 = vector.broadcast %3 : vector<1x128xf32> to vector<64x128xf32>
    %5 = arith.mulf %2, %4 : vector<64x128xf32>
    %c0_5 = arith.constant 0 : index
    %c0_6 = arith.constant 0 : index
    %6 = vector.load %arg4[%c0_5, %c0_6] : memref<1x128xf32, #tpu.memory_space<vmem>>, vector<1x128xf32>
    %7 = vector.broadcast %6 : vector<1x128xf32> to vector<64x128xf32>
    %8 = arith.addf %5, %7 : vector<64x128xf32>
    %cst_7 = arith.constant 0.000000e+00 : f32
    %9 = vector.broadcast %cst_7 : f32 to vector<64x128xf32>
    %10 = arith.cmpf oge, %8, %9 : vector<64x128xf32>
    %cst_8 = arith.constant 2.000000e-01 : f32
    %11 = vector.broadcast %cst_8 : f32 to vector<64x128xf32>
    %12 = arith.mulf %11, %8 : vector<64x128xf32>
    %13 = arith.select %10, %8, %12 : vector<64x128xi1>, vector<64x128xf32>
    %c0_9 = arith.constant 0 : index
    %c0_10 = arith.constant 0 : index
    %14 = vector.load %arg5[%c0_9, %c0_10] : memref<64x128xf32, #tpu.memory_space<vmem>>, vector<64x128xf32>
    tpu.vector_store %arg5[%c0_9, %c0_10], %13 {strides = array<i32>} : memref<64x128xf32, #tpu.memory_space<vmem>>, vector<64x128xf32>,
    return
  }
  func.func @transform_0(%arg0: i32) -> (i32, i32) {
    %c0_i32 = arith.constant 0 : i32
    %c0_i32_0 = arith.constant 0 : i32
    return %arg0, %c0_i32 : i32, i32
  }
  func.func @transform_1(%arg0: i32) -> (i32, i32) {
    %c0_i32 = arith.constant 0 : i32
    %c0_i32_0 = arith.constant 0 : i32
    %c0_i32_1 = arith.constant 0 : i32
    return %c0_i32, %c0_i32_0 : i32, i32
  }
  func.func @transform_2(%arg0: i32) -> (i32, i32) {
    %c0_i32 = arith.constant 0 : i32
    %c0_i32_0 = arith.constant 0 : i32
    %c0_i32_1 = arith.constant 0 : i32
    return %c0_i32, %c0_i32_0 : i32, i32
  }
  func.func @transform_3(%arg0: i32) -> (i32, i32) {
    %c0_i32 = arith.constant 0 : i32
    %c0_i32_0 = arith.constant 0 : i32
    %c0_i32_1 = arith.constant 0 : i32
    return %c0_i32, %c0_i32_0 : i32, i32
  }
  func.func @transform_4(%arg0: i32) -> (i32, i32) {
    %c0_i32 = arith.constant 0 : i32
    %c0_i32_0 = arith.constant 0 : i32
    return %arg0, %c0_i32 : i32, i32
  }
}

</mosaic_0001>

<bundles_post_ra>
// kernel: cnn_block.3
= control target key start
LH: loop header
LB: loop body
LE: loop exit
PB: predicated region body
PF: predicated region fallthrough
CT: control target
= control target key end

     0   :  { %s611_s15 = smov 0   ;;  %s678_s0 = inlined_call_operand.vmem [shape: bf16[128,128], index: 0, kind: input, shape index: {}]   ;;  %s679_s1 = inlined_call_operand.vmem [shape: bf16[128,128], index: 1, kind: input, shape index: {}]   ;;  %s680_s2 = inlined_call_operand.vmem [shape: f32[1,128], index: 2, kind: input, shape index: {}]   ;;  %s681_s3 = inlined_call_operand.vmem [shape: f32[1,128], index: 3, kind: input, shape index: {}]   ;;  %s682_s4 = inlined_call_operand.vmem [shape: f32[128,128], index: 4, kind: output, shape index: {}]  }
   0x1 LB: > { %s481_s16 = sadd.s32 4294967295, %s584_s15   ;;  %p485_p0 = scmp.ge.s32.totalorder %s584_s15, 1  ;;  %s584_s15 = sphi %s611_s15, %s14_s15  }
   0x2   : > { %p163_p1 = scmp.lt.s32.totalorder %s584_s15, 3 }
   0x4   : > { %p164_p2 = pnand %p485_p0, %p163_p1 }
   0x5   : > { %s486_s19 = sshll.u32 (!%p164_p2), %s481_s16, 3 }
   0x6   : > { %167 = sbr.rel (%p164_p2) target bundleno = 252 (0xfc), region = 36  ;;  %p190_p3 = scmp.lt.s32.totalorder (!%p164_p2), %s486_s19, 15 }
   0xb   : > { %v566_v0 = vld [vmem:[%s679_s1 + $0x38] sm:$0xff]   ;;  %v567_v1 = vld [vmem:[%s679_s1 + $0x30] sm:$0xff]   ;;  %s684_s19 = smov (!%p190_p3, %s486_s19), 15  ;;  %v568_v2 = vld [vmem:[%s679_s1 + $0x28] sm:$0xff]  }
   0xc   : > { %518 = vmatprep.subr.bf16.mxu0 %v566_v0  ;;  %542 = vmatprep.subr.bf16.mxu1 %v566_v0  ;;  %s487_s24 = sshll.u32 %s684_s19, 2  ;;  %v569_v3 = vld [vmem:[%s679_s1 + $0x20] sm:$0xff]   ;;  %v570_v6 = vld [vmem:[%s679_s1 + $0x18] sm:$0xff]   ;;  %v571_v7 = vld [vmem:[%s679_s1 + $0x10] sm:$0xff]   ;;  %s489_s17 = sshll.u32 %s684_s19, 3 }
   0xd   : > { %519 = vmatpush3.bf16.msra.mxu0 %v566_v0  ;;  %550 = vmatpush3.bf16.msra.mxu1 %v566_v0  ;;  %s634_s27 = scalar_lea.vmem %s678_s0, %s487_s24  ;;  %v572_v8 = vld [vmem:[%s679_s1 + $0x8] sm:$0xff]   ;;  %v573_v9 = vld [vmem:[%s679_s1] sm:$0xff]   ;;  %s665_s21 = scalar_lea.vmem %s682_s4, %s489_s17 }
   0xe   : > { %520 = vmatprep.subr.bf16.mxu0 %v567_v1  ;;  %543 = vmatprep.subr.bf16.mxu1 %v567_v1  ;;  %v574_v4 = vld [vmem:[%s634_s27] sm:$0xff]   ;;  %v575_v5 = vld [vmem:[%s634_s27 + $0x10] sm:$0xff]   ;;  %v576_v10 = vld [vmem:[%s634_s27 + $0x8] sm:$0xff]  }
   0xf   : > { %534 = vmatprep.mubr.bf16.mxu0 %v574_v4  ;;  %538 = vmatprep.mubr.bf16.mxu1 %v575_v5  ;;  %v577_v11 = vld [vmem:[%s634_s27 + $0x18] sm:$0xff]   ;;  %v502_v12 = vld [vmem:[%s680_s2] ss:$0 sm:$0xff] }
  0x10   : > { %v503_v14 = vld [vmem:[%s681_s3] ss:$0 sm:$0xff] }
  0x11   : > { %521 = vmatpush3.bf16.msra.mxu0 %v567_v1  ;;  %551 = vmatpush3.bf16.msra.mxu1 %v567_v1 }
  0x12   : > { %522 = vmatprep.subr.bf16.mxu0 %v568_v2  ;;  %544 = vmatprep.subr.bf16.mxu1 %v568_v2 }
  0x15   : > { %523 = vmatpush3.bf16.msra.mxu0 %v568_v2  ;;  %552 = vmatpush3.bf16.msra.mxu1 %v568_v2 }
  0x16   : > { %524 = vmatprep.subr.bf16.mxu0 %v569_v3  ;;  %545 = vmatprep.subr.bf16.mxu1 %v569_v3 }
  0x19   : > { %525 = vmatpush3.bf16.msra.mxu0 %v569_v3  ;;  %553 = vmatpush3.bf16.msra.mxu1 %v569_v3 }
  0x1a   : > { %526 = vmatprep.subr.bf16.mxu0 %v570_v6  ;;  %546 = vmatprep.subr.bf16.mxu1 %v570_v6 }
  0x1d   : > { %527 = vmatpush3.bf16.msra.mxu0 %v570_v6  ;;  %554 = vmatpush3.bf16.msra.mxu1 %v570_v6 }
  0x1e   : > { %528 = vmatprep.subr.bf16.mxu0 %v571_v7  ;;  %547 = vmatprep.subr.bf16.mxu1 %v571_v7 }
  0x21   : > { %529 = vmatpush3.bf16.msra.mxu0 %v571_v7  ;;  %555 = vmatpush3.bf16.msra.mxu1 %v571_v7 }
  0x22   : > { %530 = vmatprep.subr.bf16.mxu0 %v572_v8  ;;  %548 = vmatprep.subr.bf16.mxu1 %v572_v8 }
  0x25   : > { %531 = vmatpush3.bf16.msra.mxu0 %v572_v8  ;;  %556 = vmatpush3.bf16.msra.mxu1 %v572_v8 }
  0x26   : > { %532 = vmatprep.subr.bf16.mxu0 %v573_v9  ;;  %549 = vmatprep.subr.bf16.mxu1 %v573_v9 }
  0x29   : > { %533 = vmatpush3.bf16.msra.mxu0 %v573_v9  ;;  %557 = vmatpush3.bf16.msra.mxu1 %v573_v9 }
  0x2c   : > { %535 = vmatmul.mubr.bf16.vlgmr.msra.gmra.mxu0 %v576_v10  ;;  %539 = vmatmul.mubr.bf16.vlgmr.msra.gmra.mxu1 %v577_v11 }
  0xec   : > { %v536_v13 = vpop.f32.mrf.mxu0  ;;  %v540_v15 = vpop.f32.mrf.mxu1 }
  0xed   : > { %v372_v16 = vmul.f32 %v536_v13, %v502_v12  ;;  %v376_v17 = vmul.f32 %v540_v15, %v502_v12 }
  0xee   : > { %v332_v18 = vpop.f32.mrf.mxu0  ;;  %v348_v19 = vpop.f32.mrf.mxu1 }
  0xef   : > { %v387_v20 = vadd.f32 %v503_v14, %v372_v16  ;;  %v391_v21 = vadd.f32 %v503_v14, %v376_v17  ;;  %v370_v22 = vmul.f32 %v502_v12, %v332_v18  ;;  %v374_v23 = vmul.f32 %v502_v12, %v348_v19 }
  0xf0   : > { %v537_v24 = vpop.f32.mrf.mxu0  ;;  %v541_v25 = vpop.f32.mrf.mxu1 }
  0xf1   : > { %vm395_vm0 = vcmp.ge.f32.partialorder %v387_v20, 0.0  ;;  %v403_v26 = vmul.f32 0.2, %v387_v20  ;;  %vm399_vm1 = vcmp.ge.f32.partialorder %v391_v21, 0.0  ;;  %v407_v27 = vmul.f32 0.2, %v391_v21 }
  0xf2   : > { %v385_v28 = vadd.f32 %v503_v14, %v370_v22  ;;  %v389_v29 = vadd.f32 %v503_v14, %v374_v23  ;;  %v373_v30 = vmul.f32 %v537_v24, %v502_v12  ;;  %v377_v31 = vmul.f32 %v541_v25, %v502_v12  ;;  %v335_v32 = vpop.f32.mrf.mxu0  ;;  %v351_v33 = vpop.f32.mrf.mxu1 }
  0xf3   : > { %v411_v34 = vsel %vm395_vm0, %v387_v20, %v403_v26  ;;  %v415_v35 = vsel %vm399_vm1, %v391_v21, %v407_v27  ;;  %v371_v36 = vmul.f32 %v502_v12, %v335_v32  ;;  %v375_v37 = vmul.f32 %v502_v12, %v351_v33 }
  0xf4   : > { %419 = vst [vmem:[%s665_s21 + $0x10] sm:$0xff] %v411_v34  ;;  %423 = vst [vmem:[%s665_s21 + $0x30] sm:$0xff] %v415_v35  ;;  %vm393_vm2 = vcmp.ge.f32.partialorder %v385_v28, 0.0  ;;  %v401_v38 = vmul.f32 0.2, %v385_v28  ;;  %vm397_vm3 = vcmp.ge.f32.partialorder %v389_v29, 0.0  ;;  %v388_v40 = vadd.f32 %v503_v14, %v373_v30 }
  0xf5   : > { %v405_v39 = vmul.f32 0.2, %v389_v29  ;;  %v392_v41 = vadd.f32 %v503_v14, %v377_v31  ;;  %v386_v42 = vadd.f32 %v503_v14, %v371_v36  ;;  %v390_v43 = vadd.f32 %v503_v14, %v375_v37 }
  0xf6   : > { %v409_v44 = vsel %vm393_vm2, %v385_v28, %v401_v38  ;;  %vm396_vm4 = vcmp.ge.f32.partialorder %v388_v40, 0.0  ;;  %v404_v46 = vmul.f32 0.2, %v388_v40 }
  0xf7   : > { %v413_v45 = vsel %vm397_vm3, %v389_v29, %v405_v39  ;;  %417 = vst [vmem:[%s665_s21] sm:$0xff] %v409_v44  ;;  %vm400_vm5 = vcmp.ge.f32.partialorder %v392_v41, 0.0  ;;  %v408_v47 = vmul.f32 0.2, %v392_v41  ;;  %vm394_vm6 = vcmp.ge.f32.partialorder %v386_v42, 0.0 }
  0xf8   : > { %421 = vst [vmem:[%s665_s21 + $0x20] sm:$0xff] %v413_v45  ;;  %v402_v48 = vmul.f32 0.2, %v386_v42  ;;  %vm398_vm7 = vcmp.ge.f32.partialorder %v390_v43, 0.0  ;;  %v406_v49 = vmul.f32 0.2, %v390_v43  ;;  %v412_v50 = vsel %vm396_vm4, %v388_v40, %v404_v46 }
  0xf9   : > { %v416_v51 = vsel %vm400_vm5, %v392_v41, %v408_v47  ;;  %420 = vst [vmem:[%s665_s21 + $0x18] sm:$0xff] %v412_v50 }
  0xfa   : > { %424 = vst [vmem:[%s665_s21 + $0x38] sm:$0xff] %v416_v51  ;;  %v410_v52 = vsel %vm394_vm6, %v386_v42, %v402_v48  ;;  %v414_v53 = vsel %vm398_vm7, %v390_v43, %v406_v49 }
  0xfb   : > { %418 = vst [vmem:[%s665_s21 + $0x8] sm:$0xff] %v410_v52  ;;  %422 = vst [vmem:[%s665_s21 + $0x28] sm:$0xff] %v414_v53 }
  0xfc PF: > { %s14_s15 = sadd.s32 1, %s584_s15  }
  0xfd   : > { %p11_p4 = scmp.ge.s32.totalorder %s14_s15, 4  }
  0xff   :  { %13 = sbr.rel (!%p11_p4) target bundleno = 1 (0x1), region = 66 }

// kernel: cnn_block.2
= control target key start
LH: loop header
LB: loop body
LE: loop exit
PB: predicated region body
PF: predicated region fallthrough
CT: control target
= control target key end

     0   :  { %s521_s12 = smov 0   ;;  %s583_s0 = inlined_call_operand.vmem [shape: bf16[128,128], index: 0, kind: input, shape index: {}]   ;;  %s584_s1 = inlined_call_operand.vmem [shape: bf16[128,128], index: 1, kind: input, shape index: {}]   ;;  %s585_s2 = inlined_call_operand.vmem [shape: f32[1,128], index: 2, kind: output, shape index: {0}]   ;;  %s586_s3 = inlined_call_operand.vmem [shape: f32[1,128], index: 3, kind: output, shape index: {1}]  }
   0x1 LB: > { %s398_s13 = sadd.s32 4294967295, %s498_s12   ;;  %p401_p0 = scmp.ge.s32.totalorder %s498_s12, 1  ;;  %s498_s12 = sphi %s521_s12, %s14_s12  }
   0x2   : > { %p131_p1 = scmp.lt.s32.totalorder %s498_s12, 3 }
   0x4   : > { %p132_p2 = pnand %p401_p0, %p131_p1 }
   0x5   : > { %s402_s14 = sshll.u32 (!%p132_p2), %s398_s13, 3  ;;  %p404_p4 = scmp.ne.s32.totalorder (!%p132_p2), %s398_s13, 0 }
   0x6   : > { %135 = sbr.rel (%p132_p2) target bundleno = 281 (0x119), region = 28  ;;  %p151_p3 = scmp.lt.s32.totalorder (!%p132_p2), %s402_s14, 15 }
   0xb   : > { %s588_s14 = smov (!%p151_p3, %s402_s14), 15  ;;  %160 = sbr.rel (%p404_p4) target bundleno = 18 (0x12), region = 32 }
   0xc   : > { %s403_s15 = sshll.u32 %s588_s14, 2 }
   0xd   : > { %s532_s18 = scalar_lea.vmem %s583_s0, %s403_s15 }
  0x10   : > { %v500_v0 = vmov 0.0  }
  0x11   : > { %161 = vst [vmem:[%s585_s2] sm:$0x1] %v500_v0  ;;  %162 = vst [vmem:[%s586_s3] sm:$0x1] %v500_v0 }
  0x12 PF: > { %v480_v1 = vld [vmem:[%s584_s1 + $0x38] sm:$0xff]   ;;  %v481_v2 = vld [vmem:[%s584_s1 + $0x30] sm:$0xff]   ;;  %v482_v3 = vld [vmem:[%s584_s1 + $0x28] sm:$0xff]  }
  0x13   : > { %431 = vmatprep.subr.bf16.mxu0 %v480_v1  ;;  %455 = vmatprep.subr.bf16.mxu1 %v480_v1  ;;  %v483_v4 = vld [vmem:[%s584_s1 + $0x20] sm:$0xff]   ;;  %v490_v6 = vld [vmem:[%s532_s18 + $0x10] sm:$0xff]   ;;  %v484_v7 = vld [vmem:[%s584_s1 + $0x18] sm:$0xff]  }
  0x14   : > { %432 = vmatpush3.bf16.msra.mxu0 %v480_v1  ;;  %463 = vmatpush3.bf16.msra.mxu1 %v480_v1  ;;  %v488_v5 = vld [vmem:[%s532_s18] sm:$0xff]   ;;  %v485_v8 = vld [vmem:[%s584_s1 + $0x10] sm:$0xff]   ;;  %v486_v9 = vld [vmem:[%s584_s1 + $0x8] sm:$0xff]  }
  0x15   : > { %433 = vmatprep.subr.bf16.mxu0 %v481_v2  ;;  %456 = vmatprep.subr.bf16.mxu1 %v481_v2  ;;  %v487_v10 = vld [vmem:[%s584_s1] sm:$0xff]   ;;  %v489_v11 = vld [vmem:[%s532_s18 + $0x8] sm:$0xff]   ;;  %v491_v12 = vld [vmem:[%s532_s18 + $0x18] sm:$0xff]  }
  0x16   : > { %447 = vmatprep.mubr.bf16.mxu0 %v488_v5  ;;  %451 = vmatprep.mubr.bf16.mxu1 %v490_v6 }
  0x18   : > { %434 = vmatpush3.bf16.msra.mxu0 %v481_v2  ;;  %464 = vmatpush3.bf16.msra.mxu1 %v481_v2  ;;  %v324_v52 = vld [vmem:[%s585_s2] sm:$0x1] }
  0x19   : > { %435 = vmatprep.subr.bf16.mxu0 %v482_v3  ;;  %457 = vmatprep.subr.bf16.mxu1 %v482_v3  ;;  %v340_v55 = vld [vmem:[%s586_s3] sm:$0x1] }
  0x1c   : > { %436 = vmatpush3.bf16.msra.mxu0 %v482_v3  ;;  %465 = vmatpush3.bf16.msra.mxu1 %v482_v3 }
  0x1d   : > { %437 = vmatprep.subr.bf16.mxu0 %v483_v4  ;;  %458 = vmatprep.subr.bf16.mxu1 %v483_v4 }
  0x20   : > { %438 = vmatpush3.bf16.msra.mxu0 %v483_v4  ;;  %466 = vmatpush3.bf16.msra.mxu1 %v483_v4 }
  0x21   : > { %439 = vmatprep.subr.bf16.mxu0 %v484_v7  ;;  %459 = vmatprep.subr.bf16.mxu1 %v484_v7 }
  0x24   : > { %440 = vmatpush3.bf16.msra.mxu0 %v484_v7  ;;  %467 = vmatpush3.bf16.msra.mxu1 %v484_v7 }
  0x25   : > { %441 = vmatprep.subr.bf16.mxu0 %v485_v8  ;;  %460 = vmatprep.subr.bf16.mxu1 %v485_v8 }
  0x28   : > { %442 = vmatpush3.bf16.msra.mxu0 %v485_v8  ;;  %468 = vmatpush3.bf16.msra.mxu1 %v485_v8 }
  0x29   : > { %443 = vmatprep.subr.bf16.mxu0 %v486_v9  ;;  %461 = vmatprep.subr.bf16.mxu1 %v486_v9 }
  0x2c   : > { %444 = vmatpush3.bf16.msra.mxu0 %v486_v9  ;;  %469 = vmatpush3.bf16.msra.mxu1 %v486_v9 }
  0x2d   : > { %445 = vmatprep.subr.bf16.mxu0 %v487_v10  ;;  %462 = vmatprep.subr.bf16.mxu1 %v487_v10 }
  0x30   : > { %446 = vmatpush3.bf16.msra.mxu0 %v487_v10  ;;  %470 = vmatpush3.bf16.msra.mxu1 %v487_v10 }
  0x33   : > { %448 = vmatmul.mubr.bf16.vlgmr.msra.gmra.mxu0 %v489_v11  ;;  %452 = vmatmul.mubr.bf16.vlgmr.msra.gmra.mxu1 %v491_v12 }
  0xf3   : > { %v449_v13 = vpop.f32.mrf.mxu0  ;;  %v453_v14 = vpop.f32.mrf.mxu1 }
  0xf4   : > { %v343_v23 = vmul.f32 %v449_v13, %v449_v13  ;;  %v347_v36 = vmul.f32 %v453_v14, %v453_v14 }
  0xf5   : > { %v293_v15 = vpop.f32.mrf.mxu0  ;;  %v309_v17 = vpop.f32.mrf.mxu1 }
  0xf6   : > { %v341_v19 = vmul.f32 %v293_v15, %v293_v15  ;;  %v345_v30 = vmul.f32 %v309_v17, %v309_v17 }
  0xf7   : > { %v450_v16 = vpop.f32.mrf.mxu0  ;;  %v454_v22 = vpop.f32.mrf.mxu1 }
  0xf8   : > { %v344_v26 = vmul.f32 %v450_v16, %v450_v16  ;;  %v348_v39 = vmul.f32 %v454_v22, %v454_v22 }
  0xf9   : > { %v296_v18 = vpop.f32.mrf.mxu0  ;;  %v312_v29 = vpop.f32.mrf.mxu1 }
  0xfa   : > { %v325_v20 = vadd.f32 %v296_v18, %v293_v15  ;;  %v342_v21 = vmul.f32 %v296_v18, %v296_v18  ;;  %v346_v34 = vmul.f32 %v312_v29, %v312_v29 }
  0xfc   : > { %v326_v24 = vadd.f32 %v449_v13, %v325_v20  ;;  %v349_v25 = vadd.f32 %v342_v21, %v341_v19 }
  0xfe   : > { %v350_v27 = vadd.f32 %v349_v25, %v343_v23  ;;  %v327_v28 = vadd.f32 %v450_v16, %v326_v24 }
 0x100   : > { %v328_v31 = vadd.f32 %v327_v28, %v309_v17  ;;  %v351_v32 = vadd.f32 %v350_v27, %v344_v26 }
 0x102   : > { %v329_v33 = vadd.f32 %v328_v31, %v312_v29  ;;  %v352_v35 = vadd.f32 %v351_v32, %v345_v30 }
 0x104   : > { %v330_v37 = vadd.f32 %v453_v14, %v329_v33  ;;  %v353_v38 = vadd.f32 %v352_v35, %v346_v34 }
 0x106   : > { %v331_v40 = vadd.f32 %v454_v22, %v330_v37  ;;  %v354_v41 = vadd.f32 %v353_v38, %v347_v36 }
 0x108   : > { %v332_v42 = vrot.slane %v331_v40, 4  ;;  %v355_v43 = vadd.f32 %v354_v41, %v348_v39 }
 0x10a   : > { %v333_v44 = vadd.f32 %v332_v42, %v331_v40  ;;  %v356_v45 = vrot.slane %v355_v43, 4 }
 0x10c   : > { %v334_v46 = vrot.slane %v333_v44, 2  ;;  %v357_v47 = vadd.f32 %v356_v45, %v355_v43 }
 0x10e   : > { %v335_v48 = vadd.f32 %v334_v46, %v333_v44  ;;  %v358_v49 = vrot.slane %v357_v47, 2 }
 0x110   : > { %v336_v50 = vrot.slane %v335_v48, 1  ;;  %v359_v51 = vadd.f32 %v358_v49, %v357_v47 }
 0x112   : > { %v337_v53 = vadd.f32 %v336_v50, %v335_v48  ;;  %v360_v54 = vrot.slane %v359_v51, 1 }
 0x114   : > { %v338_v56 = vadd.f32 %v337_v53, %v324_v52  ;;  %v361_v57 = vadd.f32 %v360_v54, %v359_v51 }
 0x116   : > { %339 = vst [vmem:[%s585_s2] sm:$0x1] %v338_v56  ;;  %v362_v58 = vadd.f32 %v361_v57, %v340_v55 }
 0x118   : > { %363 = vst [vmem:[%s586_s3] sm:$0x1] %v362_v58 }
 0x119 PF: > { %s14_s12 = sadd.s32 1, %s498_s12  }
 0x11a   : > { %p11_p5 = scmp.ge.s32.totalorder %s14_s12, 4  }
 0x11c   :  { %13 = sbr.rel (!%p11_p5) target bundleno = 1 (0x1), region = 66 }

</bundles_post_ra>
